<compile_context>
chip_gen: v6e
topology: v6e:2x2x1
jax: 0.10.0
libtpu: 0.0.40
codegen_flags: <defaults>
</compile_context>

<pallas_src>
import jax
import jax.numpy as jnp
from jax import lax
from jax.experimental import pallas as pl
from jax.experimental.pallas import tpu as pltpu

# --- model hyperparameters (small, consistent with the module's structure) ---
N_DIMS = 4         # n_dims
N_EMBD = 32        # n_embd
N_LAYER = 3        # n_layer
N_DIMS_OUT = 1     # n_dims_out
KERNEL_SIZE = 5    # kernel_size
B = 2              # batch size
N_POINTS = 8       # number of (x, y) points; interleaved length L = 2*N
OUT_LANES = 128    # lane-dense padded output width


def _pack_weights(params, d, e, n_layer, k_sz):
    """Pack every parameter into ONE (R, E) f32 slab (static layout).

    rows [0, d)               : W_in^T                    (d, E)
    row  d                    : b_in                      (E,)
    rows [d+1, d+1+n_layer)   : conv biases               (n_layer, E)
    row  d+1+n_layer          : W_out row                 (E,)
    row  d+2+n_layer          : b_out replicated on lanes (E,)
    rows [cw_base, cw_base + n_layer*k_sz*E):
        conv weights; row ((l*k_sz + s)*E + c_in), col c_out, where s is the
        causal shift (s = k_sz-1-k of the PyTorch Conv1d tap index k).
    """
    w_in, b_in, conv_w, conv_b, w_out, b_out = params
    row_bin = d
    row_cb = d + 1
    row_wout = d + 1 + n_layer
    row_bout = d + 2 + n_layer
    cw_base = ((d + 3 + n_layer + 7) // 8) * 8            # 8-sublane aligned
    header = jnp.zeros((cw_base, e), jnp.float32)
    header = header.at[0:d, :].set(w_in.T.astype(jnp.float32))
    header = header.at[row_bin, :].set(b_in.astype(jnp.float32))
    header = header.at[row_cb:row_cb + n_layer, :].set(conv_b.astype(jnp.float32))
    header = header.at[row_wout, :].set(w_out[0].astype(jnp.float32))
    header = header.at[row_bout, :].set(jnp.full((e,), b_out[0], jnp.float32))
    # Conv1d weight (layer, out, in, k) -> (layer, k, in, out) -> flip k so axis
    # 1 is indexed by the causal shift s = k_sz-1-k; flatten to E-row blocks.
    cw = jnp.flip(jnp.transpose(conv_w, (0, 3, 2, 1)), axis=1).astype(jnp.float32)
    wslab = jnp.concatenate([header, cw.reshape(n_layer * k_sz * e, e)], axis=0)
    idx = dict(bin=row_bin, cb=row_cb, wout=row_wout, bout=row_bout, cw=cw_base)
    return wslab, idx


def causal_conv_model_forward(xs, ys, params):
    """xs, ys: (B, N, n_dims) -> logits at the y-token positions: (B, N, 1)."""
    w_in, b_in, conv_w, conv_b, w_out, b_out = params
    bsz, n_pts, d_x = xs.shape
    d = ys.shape[2]
    e = w_in.shape[0]
    k_sz = conv_w.shape[-1]
    n_layer = conv_w.shape[0]
    seq = 2 * n_pts                  # interleaved length per batch element
    bl = bsz * seq                   # folded slab height (rows on sublanes)
    assert seq & (seq - 1) == 0, "interleaved length must be a power of two (bit-trick masks)"
    assert k_sz - 1 < seq, "kernel taps must fit inside one sequence"
    assert n_pts <= OUT_LANES and w_out.shape == (1, e), "readout assumes n_dims_out == 1"
    out_rows = ((bsz + 7) // 8) * 8  # pad output rows to a full sublane tile
    seq_log2 = seq.bit_length() - 1

    # ---- wrapper-side layout (pure plumbing, fused by XLA under jit) --------
    wslab, idx = _pack_weights(params, d, e, n_layer, k_sz)
    # _combine: zs[b, 2q] = ys[b, q], zs[b, 2q+1] = xs[b, q] (zero-padded to
    # ys' width); folded to a (B*L, D) slab so row b*L + p == 2*(b*N) + p.
    xs_wide = xs if d_x == d else jnp.pad(xs, ((0, 0), (0, 0), (0, d - d_x)))
    zs2 = jnp.stack([ys, xs_wide], axis=2).reshape(bl, d).astype(jnp.float32)

    def kernel(zs_ref, w_ref, out_ref):
        f32 = jnp.float32
        # ---- carve the packed weight slab (static slices: free) -------------
        win = w_ref[0:d, :]                                     # (D, E)
        b_in_row = w_ref[idx['bin']:idx['bin'] + 1, :]          # (1, E)
        wout_row = w_ref[idx['wout']:idx['wout'] + 1, :]        # (1, E)
        bout_row = w_ref[idx['bout']:idx['bout'] + 1, :]        # (1, E) replicated

        # ---- _read_in --------------------------------------------------------
        h = jnp.dot(zs_ref[...], win, preferred_element_type=f32) + b_in_row   # (B*L, E)

        # Within-sequence position of every folded row; causal-left-pad /
        # batch-boundary masks hoisted once and reused by every layer.
        pos = lax.broadcasted_iota(jnp.int32, (bl, e), 0) & (seq - 1)
        tap_masks = [pos >= s for s in range(1, k_sz)]

        # ---- _backbone: n_layer x (causal conv -> ReLU) ----------------------
        # One accumulated (B*L,E)@(E,E) matmul per tap (MXU is ~idle at this
        # size); taps are XLU sublane rolls with the hoisted masks.
        for layer in range(n_layer):
            base = idx['cw'] + layer * k_sz * e
            acc = jnp.dot(h, w_ref[base:base + e, :], preferred_element_type=f32)
            cur = h
            for s in range(1, k_sz):
                cur = pltpu.roll(cur, shift=1, axis=0)          # cur[r] = h[r - s]
                tap = jnp.where(tap_masks[s - 1], cur, 0.0)
                w_s = w_ref[base + s * e:base + (s + 1) * e, :]
                acc = acc + jnp.dot(tap, w_s, preferred_element_type=f32)
            cb_row = w_ref[idx['cb'] + layer:idx['cb'] + layer + 1, :]
            h = jnp.maximum(acc + cb_row, 0.0)

        # ---- _read_out + [:, ::2, :] selection, lane-dense output ------------
        # (E -> 1) readout on VPU + lane reduce; b_out added exactly once via a
        # lane-0 one-hot (no width-1 MXU op, no scalar extraction).
        one0 = (lax.broadcasted_iota(jnp.int32, (1, e), 1) == 0).astype(f32)
        logit = jnp.sum(h * wout_row + bout_row * one0, axis=1, keepdims=True)  # (B*L, 1)
        # Scatter row b*seq + 2j -> out[b, j]; padding rows/cols stay zero and
        # are sliced off in the wrapper.  Full (out_rows, 128) unmasked store.
        t_i = lax.broadcasted_iota(jnp.int32, (bl, OUT_LANES), 0)
        j_i = lax.broadcasted_iota(jnp.int32, (bl, OUT_LANES), 1)
        col_sel = ((t_i & (seq - 1)) == (j_i * 2)).astype(f32)                   # (B*L, 128)
        b_i = lax.broadcasted_iota(jnp.int32, (out_rows, bl), 0)
        t2_i = lax.broadcasted_iota(jnp.int32, (out_rows, bl), 1)
        row_sel = ((t2_i >> seq_log2) == b_i).astype(f32)                        # (rows, B*L)
        out_ref[...] = jnp.dot(row_sel, logit * col_sel, preferred_element_type=f32)

    # Grid-less call: single invocation, whole arrays in VMEM, 2 input DMAs.
    out_padded = pl.pallas_call(
        kernel,
        out_shape=jax.ShapeDtypeStruct((out_rows, OUT_LANES), jnp.float32),
    )(zs2, wslab)

    # Padding rows/columns are zero; slice back to (B, N, n_dims_out).
    return out_padded[:bsz, :n_pts, None]


def reference_forward(xs, ys, params):
    """Pure-JAX reference mirroring the PyTorch module (uses lax conv)."""
    w_in, b_in, conv_w, conv_b, w_out, b_out = params
    bsz, n_pts, d = xs.shape
    k_sz = conv_w.shape[-1]
    zs = jnp.stack([ys, xs], axis=2).reshape(bsz, 2 * n_pts, d)
    h = zs @ w_in.T + b_in                                # (B, L, E)
    hc = jnp.transpose(h, (0, 2, 1))                      # (B, E, L) — PyTorch NCL
    for layer in range(conv_w.shape[0]):
        xpad = jnp.pad(hc, ((0, 0), (0, 0), (k_sz - 1, 0)))
        conv = lax.conv_general_dilated(
            xpad, conv_w[layer], window_strides=(1,), padding='VALID',
            dimension_numbers=('NCH', 'OIH', 'NCH'))
        hc = jnp.maximum(conv + conv_b[layer][None, :, None], 0.0)
    h = jnp.transpose(hc, (0, 2, 1))
    logits = h @ w_out.T + b_out
    return logits[:, ::2, :]


if __name__ == "__main__":
    key = jax.random.PRNGKey(0)
    k = jax.random.split(key, 8)

    # Deterministic synthetic parameters in PyTorch-native layouts:
    #   nn.Linear weight: (out, in);  Conv1d weight: (out, in, k).
    w_in = jax.random.normal(k[0], (N_EMBD, N_DIMS), jnp.float32) / jnp.sqrt(N_DIMS)
    b_in = jax.random.normal(k[1], (N_EMBD,), jnp.float32) * 0.1
    conv_w = jax.random.normal(k[2], (N_LAYER, N_EMBD, N_EMBD, KERNEL_SIZE),
                               jnp.float32) / jnp.sqrt(N_EMBD * KERNEL_SIZE)
    conv_b = jax.random.normal(k[3], (N_LAYER, N_EMBD), jnp.float32) * 0.1
    w_out = jax.random.normal(k[4], (N_DIMS_OUT, N_EMBD), jnp.float32) / jnp.sqrt(N_EMBD)
    b_out = jax.random.normal(k[5], (N_DIMS_OUT,), jnp.float32) * 0.1
    params = (w_in, b_in, conv_w, conv_b, w_out, b_out)

    xs = jax.random.normal(k[6], (B, N_POINTS, N_DIMS), jnp.float32)
    ys = jax.random.normal(k[7], (B, N_POINTS, N_DIMS), jnp.float32)

    out = jax.jit(causal_conv_model_forward)(xs, ys, params)
    out = jax.block_until_ready(out)

    ref = reference_forward(xs, ys, params)
    assert out.shape == (B, N_POINTS, N_DIMS_OUT), out.shape
    if not jnp.allclose(out, ref, atol=1e-4, rtol=1e-4):
        raise AssertionError("Pallas kernel output mismatches JAX reference")
    print("KERNEL_OK")
</pallas_src>

<mosaic_0001>
module attributes {stable_mosaic.version = 11 : i64} {
  func.func @kernel(%arg0: memref<32x4xf32, #tpu.memory_space<vmem>>, %arg1: memref<496x32xf32, #tpu.memory_space<vmem>>, %arg2: memref<8x128xf32, #tpu.memory_space<vmem>>) attributes {dimension_semantics = [], scalar_prefetch = 0 : i64, scratch_operands = 0 : i64, tpu.core_type = #tpu.core_type<tc>} {
    %c0 = arith.constant 0 : index
    %c0_0 = arith.constant 0 : index
    %0 = vector.load %arg1[%c0, %c0_0] : memref<496x32xf32, #tpu.memory_space<vmem>>, vector<4x32xf32>
    %c4 = arith.constant 4 : index
    %c0_1 = arith.constant 0 : index
    %1 = vector.load %arg1[%c4, %c0_1] : memref<496x32xf32, #tpu.memory_space<vmem>>, vector<1x32xf32>
    %c8 = arith.constant 8 : index
    %c0_2 = arith.constant 0 : index
    %2 = vector.load %arg1[%c8, %c0_2] : memref<496x32xf32, #tpu.memory_space<vmem>>, vector<1x32xf32>
    %c9 = arith.constant 9 : index
    %c0_3 = arith.constant 0 : index
    %3 = vector.load %arg1[%c9, %c0_3] : memref<496x32xf32, #tpu.memory_space<vmem>>, vector<1x32xf32>
    %c0_4 = arith.constant 0 : index
    %c0_5 = arith.constant 0 : index
    %4 = vector.load %arg0[%c0_4, %c0_5] : memref<32x4xf32, #tpu.memory_space<vmem>>, vector<32x4xf32>
    %cst = arith.constant dense<0.000000e+00> : vector<32x32xf32>
    %5 = tpu.matmul %4, %0, %cst {dimension_numbers = #tpu.dot_dimension_numbers<[1], [0], [0], [1], [0, 0, 1, 1], [], []>} : vector<32x4xf32>, vector<4x32xf32>, vector<32x32xf32> -> vector<32x32xf32>
    %6 = vector.broadcast %1 : vector<1x32xf32> to vector<32x32xf32>
    %7 = arith.addf %5, %6 : vector<32x32xf32>
    %8 = tpu.iota {dimensions = array<i32: 0>} : vector<32x32xi32>
    %c15_i32 = arith.constant 15 : i32
    %9 = vector.broadcast %c15_i32 : i32 to vector<32x32xi32>
    %10 = arith.andi %8, %9 : vector<32x32xi32>
    %c1_i32 = arith.constant 1 : i32
    %11 = vector.broadcast %c1_i32 : i32 to vector<32x32xi32>
    %12 = arith.cmpi sge, %10, %11 : vector<32x32xi32>
    %c2_i32 = arith.constant 2 : i32
    %13 = vector.broadcast %c2_i32 : i32 to vector<32x32xi32>
    %14 = arith.cmpi sge, %10, %13 : vector<32x32xi32>
    %c3_i32 = arith.constant 3 : i32
    %15 = vector.broadcast %c3_i32 : i32 to vector<32x32xi32>
    %16 = arith.cmpi sge, %10, %15 : vector<32x32xi32>
    %c4_i32 = arith.constant 4 : i32
    %17 = vector.broadcast %c4_i32 : i32 to vector<32x32xi32>
    %18 = arith.cmpi sge, %10, %17 : vector<32x32xi32>
    %c16 = arith.constant 16 : index
    %c0_6 = arith.constant 0 : index
    %19 = vector.load %arg1[%c16, %c0_6] : memref<496x32xf32, #tpu.memory_space<vmem>>, vector<32x32xf32>
    %cst_7 = arith.constant dense<0.000000e+00> : vector<32x32xf32>
    %20 = tpu.matmul %7, %19, %cst_7 {dimension_numbers = #tpu.dot_dimension_numbers<[1], [0], [0], [1], [0, 0, 1, 1], [], []>} : vector<32x32xf32>, vector<32x32xf32>, vector<32x32xf32> -> vector<32x32xf32>
    %c1_i32_8 = arith.constant 1 : i32
    %21 = tpu.dynamic_rotate %7 by %c1_i32_8 dim 0 : vector<32x32xf32>, i32 -> vector<32x32xf32>
    %cst_9 = arith.constant 0.000000e+00 : f32
    %22 = vector.broadcast %cst_9 : f32 to vector<32x32xf32>
    %23 = arith.select %12, %21, %22 : vector<32x32xi1>, vector<32x32xf32>
    %c48 = arith.constant 48 : index
    %c0_10 = arith.constant 0 : index
    %24 = vector.load %arg1[%c48, %c0_10] : memref<496x32xf32, #tpu.memory_space<vmem>>, vector<32x32xf32>
    %cst_11 = arith.constant dense<0.000000e+00> : vector<32x32xf32>
    %25 = tpu.matmul %23, %24, %cst_11 {dimension_numbers = #tpu.dot_dimension_numbers<[1], [0], [0], [1], [0, 0, 1, 1], [], []>} : vector<32x32xf32>, vector<32x32xf32>, vector<32x32xf32> -> vector<32x32xf32>
    %26 = arith.addf %20, %25 : vector<32x32xf32>
    %c1_i32_12 = arith.constant 1 : i32
    %27 = tpu.dynamic_rotate %21 by %c1_i32_12 dim 0 : vector<32x32xf32>, i32 -> vector<32x32xf32>
    %cst_13 = arith.constant 0.000000e+00 : f32
    %28 = vector.broadcast %cst_13 : f32 to vector<32x32xf32>
    %29 = arith.select %14, %27, %28 : vector<32x32xi1>, vector<32x32xf32>
    %c80 = arith.constant 80 : index
    %c0_14 = arith.constant 0 : index
    %30 = vector.load %arg1[%c80, %c0_14] : memref<496x32xf32, #tpu.memory_space<vmem>>, vector<32x32xf32>
    %cst_15 = arith.constant dense<0.000000e+00> : vector<32x32xf32>
    %31 = tpu.matmul %29, %30, %cst_15 {dimension_numbers = #tpu.dot_dimension_numbers<[1], [0], [0], [1], [0, 0, 1, 1], [], []>} : vector<32x32xf32>, vector<32x32xf32>, vector<32x32xf32> -> vector<32x32xf32>
    %32 = arith.addf %26, %31 : vector<32x32xf32>
    %c1_i32_16 = arith.constant 1 : i32
    %33 = tpu.dynamic_rotate %27 by %c1_i32_16 dim 0 : vector<32x32xf32>, i32 -> vector<32x32xf32>
    %cst_17 = arith.constant 0.000000e+00 : f32
    %34 = vector.broadcast %cst_17 : f32 to vector<32x32xf32>
    %35 = arith.select %16, %33, %34 : vector<32x32xi1>, vector<32x32xf32>
    %c112 = arith.constant 112 : index
    %c0_18 = arith.constant 0 : index
    %36 = vector.load %arg1[%c112, %c0_18] : memref<496x32xf32, #tpu.memory_space<vmem>>, vector<32x32xf32>
    %cst_19 = arith.constant dense<0.000000e+00> : vector<32x32xf32>
    %37 = tpu.matmul %35, %36, %cst_19 {dimension_numbers = #tpu.dot_dimension_numbers<[1], [0], [0], [1], [0, 0, 1, 1], [], []>} : vector<32x32xf32>, vector<32x32xf32>, vector<32x32xf32> -> vector<32x32xf32>
    %38 = arith.addf %32, %37 : vector<32x32xf32>
    %c1_i32_20 = arith.constant 1 : i32
    %39 = tpu.dynamic_rotate %33 by %c1_i32_20 dim 0 : vector<32x32xf32>, i32 -> vector<32x32xf32>
    %cst_21 = arith.constant 0.000000e+00 : f32
    %40 = vector.broadcast %cst_21 : f32 to vector<32x32xf32>
    %41 = arith.select %18, %39, %40 : vector<32x32xi1>, vector<32x32xf32>
    %c144 = arith.constant 144 : index
    %c0_22 = arith.constant 0 : index
    %42 = vector.load %arg1[%c144, %c0_22] : memref<496x32xf32, #tpu.memory_space<vmem>>, vector<32x32xf32>
    %cst_23 = arith.constant dense<0.000000e+00> : vector<32x32xf32>
    %43 = tpu.matmul %41, %42, %cst_23 {dimension_numbers = #tpu.dot_dimension_numbers<[1], [0], [0], [1], [0, 0, 1, 1], [], []>} : vector<32x32xf32>, vector<32x32xf32>, vector<32x32xf32> -> vector<32x32xf32>
    %44 = arith.addf %38, %43 : vector<32x32xf32>
    %c5 = arith.constant 5 : index
    %c0_24 = arith.constant 0 : index
    %45 = vector.load %arg1[%c5, %c0_24] : memref<496x32xf32, #tpu.memory_space<vmem>>, vector<1x32xf32>
    %46 = vector.broadcast %45 : vector<1x32xf32> to vector<32x32xf32>
    %47 = arith.addf %44, %46 : vector<32x32xf32>
    %cst_25 = arith.constant 0.000000e+00 : f32
    %48 = vector.broadcast %cst_25 : f32 to vector<32x32xf32>
    %49 = arith.maximumf %47, %48 : vector<32x32xf32>
    %c176 = arith.constant 176 : index
    %c0_26 = arith.constant 0 : index
    %50 = vector.load %arg1[%c176, %c0_26] : memref<496x32xf32, #tpu.memory_space<vmem>>, vector<32x32xf32>
    %cst_27 = arith.constant dense<0.000000e+00> : vector<32x32xf32>
    %51 = tpu.matmul %49, %50, %cst_27 {dimension_numbers = #tpu.dot_dimension_numbers<[1], [0], [0], [1], [0, 0, 1, 1], [], []>} : vector<32x32xf32>, vector<32x32xf32>, vector<32x32xf32> -> vector<32x32xf32>
    %c1_i32_28 = arith.constant 1 : i32
    %52 = tpu.dynamic_rotate %49 by %c1_i32_28 dim 0 : vector<32x32xf32>, i32 -> vector<32x32xf32>
    %cst_29 = arith.constant 0.000000e+00 : f32
    %53 = vector.broadcast %cst_29 : f32 to vector<32x32xf32>
    %54 = arith.select %12, %52, %53 : vector<32x32xi1>, vector<32x32xf32>
    %c208 = arith.constant 208 : index
    %c0_30 = arith.constant 0 : index
    %55 = vector.load %arg1[%c208, %c0_30] : memref<496x32xf32, #tpu.memory_space<vmem>>, vector<32x32xf32>
    %cst_31 = arith.constant dense<0.000000e+00> : vector<32x32xf32>
    %56 = tpu.matmul %54, %55, %cst_31 {dimension_numbers = #tpu.dot_dimension_numbers<[1], [0], [0], [1], [0, 0, 1, 1], [], []>} : vector<32x32xf32>, vector<32x32xf32>, vector<32x32xf32> -> vector<32x32xf32>
    %57 = arith.addf %51, %56 : vector<32x32xf32>
    %c1_i32_32 = arith.constant 1 : i32
    %58 = tpu.dynamic_rotate %52 by %c1_i32_32 dim 0 : vector<32x32xf32>, i32 -> vector<32x32xf32>
    %cst_33 = arith.constant 0.000000e+00 : f32
    %59 = vector.broadcast %cst_33 : f32 to vector<32x32xf32>
    %60 = arith.select %14, %58, %59 : vector<32x32xi1>, vector<32x32xf32>
    %c240 = arith.constant 240 : index
    %c0_34 = arith.constant 0 : index
    %61 = vector.load %arg1[%c240, %c0_34] : memref<496x32xf32, #tpu.memory_space<vmem>>, vector<32x32xf32>
    %cst_35 = arith.constant dense<0.000000e+00> : vector<32x32xf32>
    %62 = tpu.matmul %60, %61, %cst_35 {dimension_numbers = #tpu.dot_dimension_numbers<[1], [0], [0], [1], [0, 0, 1, 1], [], []>} : vector<32x32xf32>, vector<32x32xf32>, vector<32x32xf32> -> vector<32x32xf32>
    %63 = arith.addf %57, %62 : vector<32x32xf32>
    %c1_i32_36 = arith.constant 1 : i32
    %64 = tpu.dynamic_rotate %58 by %c1_i32_36 dim 0 : vector<32x32xf32>, i32 -> vector<32x32xf32>
    %cst_37 = arith.constant 0.000000e+00 : f32
    %65 = vector.broadcast %cst_37 : f32 to vector<32x32xf32>
    %66 = arith.select %16, %64, %65 : vector<32x32xi1>, vector<32x32xf32>
    %c272 = arith.constant 272 : index
    %c0_38 = arith.constant 0 : index
    %67 = vector.load %arg1[%c272, %c0_38] : memref<496x32xf32, #tpu.memory_space<vmem>>, vector<32x32xf32>
    %cst_39 = arith.constant dense<0.000000e+00> : vector<32x32xf32>
    %68 = tpu.matmul %66, %67, %cst_39 {dimension_numbers = #tpu.dot_dimension_numbers<[1], [0], [0], [1], [0, 0, 1, 1], [], []>} : vector<32x32xf32>, vector<32x32xf32>, vector<32x32xf32> -> vector<32x32xf32>
    %69 = arith.addf %63, %68 : vector<32x32xf32>
    %c1_i32_40 = arith.constant 1 : i32
    %70 = tpu.dynamic_rotate %64 by %c1_i32_40 dim 0 : vector<32x32xf32>, i32 -> vector<32x32xf32>
    %cst_41 = arith.constant 0.000000e+00 : f32
    %71 = vector.broadcast %cst_41 : f32 to vector<32x32xf32>
    %72 = arith.select %18, %70, %71 : vector<32x32xi1>, vector<32x32xf32>
    %c304 = arith.constant 304 : index
    %c0_42 = arith.constant 0 : index
    %73 = vector.load %arg1[%c304, %c0_42] : memref<496x32xf32, #tpu.memory_space<vmem>>, vector<32x32xf32>
    %cst_43 = arith.constant dense<0.000000e+00> : vector<32x32xf32>
    %74 = tpu.matmul %72, %73, %cst_43 {dimension_numbers = #tpu.dot_dimension_numbers<[1], [0], [0], [1], [0, 0, 1, 1], [], []>} : vector<32x32xf32>, vector<32x32xf32>, vector<32x32xf32> -> vector<32x32xf32>
    %75 = arith.addf %69, %74 : vector<32x32xf32>
    %c6 = arith.constant 6 : index
    %c0_44 = arith.constant 0 : index
    %76 = vector.load %arg1[%c6, %c0_44] : memref<496x32xf32, #tpu.memory_space<vmem>>, vector<1x32xf32>
    %77 = vector.broadcast %76 : vector<1x32xf32> to vector<32x32xf32>
    %78 = arith.addf %75, %77 : vector<32x32xf32>
    %cst_45 = arith.constant 0.000000e+00 : f32
    %79 = vector.broadcast %cst_45 : f32 to vector<32x32xf32>
    %80 = arith.maximumf %78, %79 : vector<32x32xf32>
    %c336 = arith.constant 336 : index
    %c0_46 = arith.constant 0 : index
    %81 = vector.load %arg1[%c336, %c0_46] : memref<496x32xf32, #tpu.memory_space<vmem>>, vector<32x32xf32>
    %cst_47 = arith.constant dense<0.000000e+00> : vector<32x32xf32>
    %82 = tpu.matmul %80, %81, %cst_47 {dimension_numbers = #tpu.dot_dimension_numbers<[1], [0], [0], [1], [0, 0, 1, 1], [], []>} : vector<32x32xf32>, vector<32x32xf32>, vector<32x32xf32> -> vector<32x32xf32>
    %c1_i32_48 = arith.constant 1 : i32
    %83 = tpu.dynamic_rotate %80 by %c1_i32_48 dim 0 : vector<32x32xf32>, i32 -> vector<32x32xf32>
    %cst_49 = arith.constant 0.000000e+00 : f32
    %84 = vector.broadcast %cst_49 : f32 to vector<32x32xf32>
    %85 = arith.select %12, %83, %84 : vector<32x32xi1>, vector<32x32xf32>
    %c368 = arith.constant 368 : index
    %c0_50 = arith.constant 0 : index
    %86 = vector.load %arg1[%c368, %c0_50] : memref<496x32xf32, #tpu.memory_space<vmem>>, vector<32x32xf32>
    %cst_51 = arith.constant dense<0.000000e+00> : vector<32x32xf32>
    %87 = tpu.matmul %85, %86, %cst_51 {dimension_numbers = #tpu.dot_dimension_numbers<[1], [0], [0], [1], [0, 0, 1, 1], [], []>} : vector<32x32xf32>, vector<32x32xf32>, vector<32x32xf32> -> vector<32x32xf32>
    %88 = arith.addf %82, %87 : vector<32x32xf32>
    %c1_i32_52 = arith.constant 1 : i32
    %89 = tpu.dynamic_rotate %83 by %c1_i32_52 dim 0 : vector<32x32xf32>, i32 -> vector<32x32xf32>
    %cst_53 = arith.constant 0.000000e+00 : f32
    %90 = vector.broadcast %cst_53 : f32 to vector<32x32xf32>
    %91 = arith.select %14, %89, %90 : vector<32x32xi1>, vector<32x32xf32>
    %c400 = arith.constant 400 : index
    %c0_54 = arith.constant 0 : index
    %92 = vector.load %arg1[%c400, %c0_54] : memref<496x32xf32, #tpu.memory_space<vmem>>, vector<32x32xf32>
    %cst_55 = arith.constant dense<0.000000e+00> : vector<32x32xf32>
    %93 = tpu.matmul %91, %92, %cst_55 {dimension_numbers = #tpu.dot_dimension_numbers<[1], [0], [0], [1], [0, 0, 1, 1], [], []>} : vector<32x32xf32>, vector<32x32xf32>, vector<32x32xf32> -> vector<32x32xf32>
    %94 = arith.addf %88, %93 : vector<32x32xf32>
    %c1_i32_56 = arith.constant 1 : i32
    %95 = tpu.dynamic_rotate %89 by %c1_i32_56 dim 0 : vector<32x32xf32>, i32 -> vector<32x32xf32>
    %cst_57 = arith.constant 0.000000e+00 : f32
    %96 = vector.broadcast %cst_57 : f32 to vector<32x32xf32>
    %97 = arith.select %16, %95, %96 : vector<32x32xi1>, vector<32x32xf32>
    %c432 = arith.constant 432 : index
    %c0_58 = arith.constant 0 : index
    %98 = vector.load %arg1[%c432, %c0_58] : memref<496x32xf32, #tpu.memory_space<vmem>>, vector<32x32xf32>
    %cst_59 = arith.constant dense<0.000000e+00> : vector<32x32xf32>
    %99 = tpu.matmul %97, %98, %cst_59 {dimension_numbers = #tpu.dot_dimension_numbers<[1], [0], [0], [1], [0, 0, 1, 1], [], []>} : vector<32x32xf32>, vector<32x32xf32>, vector<32x32xf32> -> vector<32x32xf32>
    %100 = arith.addf %94, %99 : vector<32x32xf32>
    %c1_i32_60 = arith.constant 1 : i32
    %101 = tpu.dynamic_rotate %95 by %c1_i32_60 dim 0 : vector<32x32xf32>, i32 -> vector<32x32xf32>
    %cst_61 = arith.constant 0.000000e+00 : f32
    %102 = vector.broadcast %cst_61 : f32 to vector<32x32xf32>
    %103 = arith.select %18, %101, %102 : vector<32x32xi1>, vector<32x32xf32>
    %c464 = arith.constant 464 : index
    %c0_62 = arith.constant 0 : index
    %104 = vector.load %arg1[%c464, %c0_62] : memref<496x32xf32, #tpu.memory_space<vmem>>, vector<32x32xf32>
    %cst_63 = arith.constant dense<0.000000e+00> : vector<32x32xf32>
    %105 = tpu.matmul %103, %104, %cst_63 {dimension_numbers = #tpu.dot_dimension_numbers<[1], [0], [0], [1], [0, 0, 1, 1], [], []>} : vector<32x32xf32>, vector<32x32xf32>, vector<32x32xf32> -> vector<32x32xf32>
    %106 = arith.addf %100, %105 : vector<32x32xf32>
    %c7 = arith.constant 7 : index
    %c0_64 = arith.constant 0 : index
    %107 = vector.load %arg1[%c7, %c0_64] : memref<496x32xf32, #tpu.memory_space<vmem>>, vector<1x32xf32>
    %108 = vector.broadcast %107 : vector<1x32xf32> to vector<32x32xf32>
    %109 = arith.addf %106, %108 : vector<32x32xf32>
    %cst_65 = arith.constant 0.000000e+00 : f32
    %110 = vector.broadcast %cst_65 : f32 to vector<32x32xf32>
    %111 = arith.maximumf %109, %110 : vector<32x32xf32>
    %112 = tpu.iota {dimensions = array<i32: 1>} : vector<1x32xi32>
    %c0_i32 = arith.constant 0 : i32
    %113 = vector.broadcast %c0_i32 : i32 to vector<1x32xi32>
    %114 = arith.cmpi eq, %112, %113 : vector<1x32xi32>
    %115 = arith.extui %114 : vector<1x32xi1> to vector<1x32xi32>
    %116 = arith.sitofp %115 : vector<1x32xi32> to vector<1x32xf32>
    %117 = vector.broadcast %2 : vector<1x32xf32> to vector<32x32xf32>
    %118 = arith.mulf %111, %117 : vector<32x32xf32>
    %119 = arith.mulf %3, %116 : vector<1x32xf32>
    %120 = vector.broadcast %119 : vector<1x32xf32> to vector<32x32xf32>
    %121 = arith.addf %118, %120 : vector<32x32xf32>
    %cst_66 = arith.constant dense<0.000000e+00> : vector<32xf32>
    %122 = vector.multi_reduction <add>, %121, %cst_66 [1] : vector<32x32xf32> to vector<32xf32>
    %123 = vector.shape_cast %122 : vector<32xf32> to vector<32x1xf32>
    %124 = tpu.iota {dimensions = array<i32: 0>} : vector<32x128xi32>
    %125 = tpu.iota {dimensions = array<i32: 1>} : vector<32x128xi32>
    %c15_i32_67 = arith.constant 15 : i32
    %126 = vector.broadcast %c15_i32_67 : i32 to vector<32x128xi32>
    %127 = arith.andi %124, %126 : vector<32x128xi32>
    %c2_i32_68 = arith.constant 2 : i32
    %128 = vector.broadcast %c2_i32_68 : i32 to vector<32x128xi32>
    %129 = arith.muli %125, %128 : vector<32x128xi32>
    %130 = arith.cmpi eq, %127, %129 : vector<32x128xi32>
    %131 = arith.extui %130 : vector<32x128xi1> to vector<32x128xi32>
    %132 = arith.sitofp %131 : vector<32x128xi32> to vector<32x128xf32>
    %133 = tpu.iota {dimensions = array<i32: 0>} : vector<8x32xi32>
    %134 = tpu.iota {dimensions = array<i32: 1>} : vector<8x32xi32>
    %c4_i32_69 = arith.constant 4 : i32
    %135 = vector.broadcast %c4_i32_69 : i32 to vector<8x32xi32>
    %136 = arith.shrsi %134, %135 : vector<8x32xi32>
    %137 = arith.cmpi eq, %136, %133 : vector<8x32xi32>
    %138 = arith.extui %137 : vector<8x32xi1> to vector<8x32xi32>
    %139 = arith.sitofp %138 : vector<8x32xi32> to vector<8x32xf32>
    %140 = vector.broadcast %123 : vector<32x1xf32> to vector<32x128xf32>
    %141 = arith.mulf %140, %132 : vector<32x128xf32>
    %cst_70 = arith.constant dense<0.000000e+00> : vector<8x128xf32>
    %142 = tpu.matmul %139, %141, %cst_70 {dimension_numbers = #tpu.dot_dimension_numbers<[1], [0], [0], [1], [0, 0, 1, 1], [], []>} : vector<8x32xf32>, vector<32x128xf32>, vector<8x128xf32> -> vector<8x128xf32>
    %c0_71 = arith.constant 0 : index
    %c0_72 = arith.constant 0 : index
    %143 = vector.load %arg2[%c0_71, %c0_72] : memref<8x128xf32, #tpu.memory_space<vmem>>, vector<8x128xf32>
    tpu.vector_store %arg2[%c0_71, %c0_72], %142 {strides = array<i32>} : memref<8x128xf32, #tpu.memory_space<vmem>>, vector<8x128xf32>,
    return
  }
}

</mosaic_0001>

<bundles_post_ra>
// kernel: causal_conv_model_forward.1
= control target key start
LH: loop header
LB: loop body
LE: loop exit
PB: predicated region body
PF: predicated region fallthrough
CT: control target
= control target key end

     0   :  { %vm36_vm0 = vcmask 1043456   ;;  %vm23_vm1 = vcmask 31744   ;;  %v125_v15 = vlaneseq  ;;  %vm171_vm2 = vcmask 261120   ;;  %s2948_s1 = inlined_call_operand.vmem [shape: f32[496,32], index: 1, kind: input, shape index: {}]   ;;  %s2949_s0 = inlined_call_operand.vmem [shape: f32[32,4], index: 0, kind: input, shape index: {}]   ;;  %s2950_s2 = inlined_call_operand.vmem [shape: f32[8,128], index: 2, kind: output, shape index: {}]  }
   0x1   :  { %v11_v0 = vld [vmem:[%s2948_s1] sm:$0xf]  ;;  %v16_v2 = vld [vmem:[%s2949_s0 + $0x8] sm:$0xff]  ;;  %v17_v3 = vld [vmem:[%s2949_s0 + $0x10] sm:$0xff]  ;;  %vm2458_vm13 = vmmov 0  }
   0x2   :  { %v15_v1 = vld [vmem:[%s2949_s0] sm:$0xff]  ;;  %2226 = vmatprep.subr.msk.mxu0 %vm36_vm0, %v11_v0  ;;  %v153_v4 = vld [vmem:[%s2948_s1 + $0x28] sm:$0xff]  ;;  %v18_v5 = vld [vmem:[%s2949_s0 + $0x18] sm:$0xff]  ;;  %v2520_v16 = vshrl.u32 %v125_v15, 7 }
   0x3   :  { %2228 = vmatprep.mubr.msk.f32.mxu0 %vm23_vm1, %v15_v1  ;;  %2227 = vmatpush3.msk.msra.mxu0 %vm36_vm0, %v11_v0  ;;  %v152_v6 = vld [vmem:[%s2948_s1 + $0x20] sm:$0xff]  ;;  %v151_v7 = vld [vmem:[%s2948_s1 + $0x18] sm:$0xff]  ;;  %v170_v8 = vld [vmem:[%s2948_s1 + $0x48] sm:$0xff] }
   0x4   :  { %2229 = vmatmul.mubr.msk.f32.vlgmr.msra.gmra.mxu0 %vm23_vm1, %v16_v2  ;;  %2248 = vmatprep.subr.mxu0 %v153_v4  ;;  %v150_v9 = vld [vmem:[%s2948_s1 + $0x10] sm:$0xff]  ;;  %v169_v10 = vld [vmem:[%s2948_s1 + $0x40] sm:$0xff]  ;;  %v168_v11 = vld [vmem:[%s2948_s1 + $0x38] sm:$0xff]  ;;  %v128_v19 = vadd.s32 16, %v2520_v16  ;;  %v2527_v23 = vand.u32 15, %v2520_v16  ;;  %vm158_vm3 = vcmp.lt.s32.totalorder %v2520_v16, 1 }
   0x5   :  { %2231 = vmatprep.mubr.msk.f32.mxu0 %vm23_vm1, %v17_v3  ;;  %2249 = vmatpush3.msra.mxu0 %v153_v4  ;;  %v167_v12 = vld [vmem:[%s2948_s1 + $0x30] sm:$0xff]  ;;  %v381_v13 = vld [vmem:[%s2948_s1 + $0x68] sm:$0xff]  ;;  %v2019_v17 = vld [vmem:[%s2948_s1 + $0x4] ss:$0 sm:$0xff] }
   0x6   :  { %2250 = vmatprep.subr.mxu0 %v152_v6  ;;  %2234 = vmatprep.subr.mxu1 %v170_v8  ;;  %v498_v14 = vld [vmem:[%s2948_s1 + $0x88] sm:$0xff]  ;;  %v2531_v27 = vand.u32 15, %v128_v19  ;;  %v497_v28 = vld [vmem:[%s2948_s1 + $0x80] sm:$0xff]  ;;  %vm134_vm4 = vcmp.ge.s32.totalorder %v2527_v23, 1  ;;  %v496_v33 = vld [vmem:[%s2948_s1 + $0x78] sm:$0xff]  ;;  %vm138_vm6 = vcmp.ge.s32.totalorder %v2527_v23, 2 }
   0x7   :  { %2251 = vmatpush3.msra.mxu0 %v152_v6  ;;  %2235 = vmatpush3.msra.mxu1 %v170_v8  ;;  %v495_v37 = vld [vmem:[%s2948_s1 + $0x70] sm:$0xff]  ;;  %v380_v42 = vld [vmem:[%s2948_s1 + $0x60] sm:$0xff]  ;;  %v379_v47 = vld [vmem:[%s2948_s1 + $0x58] sm:$0xff]  ;;  %vm142_vm7 = vcmp.ge.s32.totalorder %v2527_v23, 3  ;;  %vm146_vm10 = vcmp.ge.s32.totalorder %v2527_v23, 4 }
   0x8   :  { %2232 = vmatmul.mubr.msk.f32.gmra.mxu0 %vm23_vm1, %v18_v5  ;;  %2252 = vmatprep.subr.mxu0 %v151_v7  ;;  %vm136_vm5 = vcmp.ge.s32.totalorder %v2531_v27, 1  ;;  %v378_v54 = vld [vmem:[%s2948_s1 + $0x50] sm:$0xff]  ;;  %vm140_vm8 = vcmp.ge.s32.totalorder %v2531_v27, 2  ;;  %v615_v61 = vld [vmem:[%s2948_s1 + $0xa8] sm:$0xff]  ;;  %vm144_vm9 = vcmp.ge.s32.totalorder %v2531_v27, 3  ;;  %v614_v2 = vld [vmem:[%s2948_s1 + $0xa0] sm:$0xff] }
   0x9   :  { %2253 = vmatpush3.msra.mxu0 %v151_v7  ;;  %2236 = vmatprep.subr.mxu1 %v169_v10  ;;  %v613_v7 = vld [vmem:[%s2948_s1 + $0x98] sm:$0xff]  ;;  %vm148_vm11 = vcmp.ge.s32.totalorder %v2531_v27, 4 }
   0xa   :  { %2254 = vmatprep.subr.mxu0 %v150_v9  ;;  %2237 = vmatpush3.msra.mxu1 %v169_v10  ;;  %v731_v19 = vld [vmem:[%s2948_s1 + $0xb8] sm:$0xff] }
   0xb   :  { %2255 = vmatpush3.msra.mxu0 %v150_v9  ;;  %2238 = vmatprep.subr.mxu1 %v168_v11  ;;  %v612_v9 = vld [vmem:[%s2948_s1 + $0x90] sm:$0xff] }
   0xc   :  { %2239 = vmatpush3.msra.mxu1 %v168_v11  ;;  %2276 = vmatprep.subr.mxu0 %v498_v14 }
   0xd   :  { %2240 = vmatprep.subr.mxu1 %v167_v12 }
   0xe   :  { %2241 = vmatpush3.msra.mxu1 %v167_v12 }
   0xf   :  { %2262 = vmatprep.subr.mxu1 %v381_v13 }
  0xc4   :  { %v2230_v18 = vpop.f32.mrf.mxu0 }
  0xc5   :  { %v112_v20 = vadd.f32 %v2230_v18, %v2019_v17  ;;  %v732_v18 = vld [vmem:[%s2948_s1 + $0xc0] sm:$0xff] }
  0xc6   :  { %v106_v21 = vpop.f32.mrf.mxu0 }
  0xc7   :  { %v107_v22 = vadd.f32 %v2019_v17, %v106_v21  ;;  %v155_v29 = vrot.slane %v112_v20, 7  ;;  %v730_v21 = vld [vmem:[%s2948_s1 + $0xb0] sm:$0xff] }
  0xc8   :  { %v2233_v24 = vpop.f32.mrf.mxu0 }
  0xc9   :  { %v154_v25 = vrot.slane %v107_v22, 7  ;;  %v122_v26 = vadd.f32 %v2233_v24, %v2019_v17  ;;  %2256 = vmatprep.mubr.msk.f32.mxu0 %vm171_vm2, %v107_v22  ;;  %v748_v22 = vld [vmem:[%s2948_s1 + $0xe0] sm:$0xff]  ;;  %v747_v24 = vld [vmem:[%s2948_s1 + $0xd8] sm:$0xff] }
  0xca   :  { %v116_v30 = vpop.f32.mrf.mxu0  ;;  %2257 = vmatmul.mubr.msk.f32.vlgmr.msra.gmra.mxu0 %vm171_vm2, %v112_v20  ;;  %v749_v20 = vld [vmem:[%s2948_s1 + $0xe8] sm:$0xff] }
  0xcb   :  { %v157_v31 = vrot.slane %v122_v26, 7  ;;  %v117_v32 = vadd.f32 %v2019_v17, %v116_v30  ;;  %2277 = vmatpush3.msra.mxu0 %v498_v14  ;;  %v161_v34 = vsel %vm158_vm3, %v154_v25, %v155_v29  ;;  %v733_v17 = vld [vmem:[%s2948_s1 + $0xc8] sm:$0xff] }
  0xcc   :  { %2278 = vmatprep.subr.mxu0 %v497_v28  ;;  %v367_v40 = vrot.slane %v161_v34, 7 }
  0xcd   :  { %v156_v35 = vrot.slane %v117_v32, 7  ;;  %2259 = vmatprep.mubr.msk.f32.mxu0 %vm171_vm2, %v117_v32  ;;  %v162_v36 = vsel %vm158_vm3, %v157_v31, %v154_v25  ;;  %2279 = vmatpush3.msra.mxu0 %v497_v28  ;;  %v746_v25 = vld [vmem:[%s2948_s1 + $0xd0] sm:$0xff]  ;;  %v1076_v28 = vld [vmem:[%s2948_s1 + $0x128] sm:$0xff] }
  0xce   :  { %2260 = vmatmul.mubr.msk.f32.gmra.mxu0 %vm171_vm2, %v122_v26  ;;  %v163_v38 = vsel %vm134_vm4, %v162_v36, 0.0  ;;  %v366_v39 = vrot.slane %v162_v36, 7  ;;  %2280 = vmatprep.subr.mxu0 %v496_v33  ;;  %v2665_v26 = vld [vmem:[%s2948_s1 + $0x108] sm:$0xff] }
  0xcf   :  { %2242 = vmatprep.mubr.msk.f32.mxu1 %vm171_vm2, %v163_v38  ;;  %v160_v41 = vsel %vm158_vm3, %v155_v29, %v156_v35  ;;  %v159_v43 = vsel %vm158_vm3, %v156_v35, %v157_v31  ;;  %2281 = vmatpush3.msra.mxu0 %v496_v33 }
  0xd0   :  { %2243 = vmatmul.mubr.msk.f32.vlgmr.msra.gmra.mxu1 %vm171_vm2, %v161_v34  ;;  %v165_v44 = vsel %vm136_vm5, %v160_v41, 0.0  ;;  %v368_v45 = vrot.slane %v160_v41, 7  ;;  %v369_v46 = vrot.slane %v159_v43, 7  ;;  %2282 = vmatprep.subr.mxu0 %v495_v37  ;;  %v372_v48 = vsel %vm158_vm3, %v366_v39, %v367_v40 }
  0xd1   :  { %2245 = vmatprep.mubr.msk.f32.mxu1 %vm171_vm2, %v165_v44  ;;  %2263 = vmatpush3.msra.mxu1 %v381_v13  ;;  %v484_v56 = vrot.slane %v372_v48, 7 }
  0xd2   :  { %2264 = vmatprep.subr.mxu1 %v380_v42  ;;  %v370_v49 = vsel %vm158_vm3, %v368_v45, %v369_v46  ;;  %v373_v50 = vsel %vm158_vm3, %v369_v46, %v366_v39  ;;  %2283 = vmatpush3.msra.mxu0 %v495_v37  ;;  %v371_v51 = vsel %vm158_vm3, %v367_v40, %v368_v45 }
  0xd3   :  { %2265 = vmatpush3.msra.mxu1 %v380_v42  ;;  %v374_v52 = vsel %vm138_vm6, %v373_v50, 0.0  ;;  %v483_v53 = vrot.slane %v373_v50, 7  ;;  %v486_v55 = vrot.slane %v370_v49, 7  ;;  %v485_v57 = vrot.slane %v371_v51, 7  ;;  %2304 = vmatprep.subr.mxu0 %v749_v20 }
  0xd4   :  { %2246 = vmatmul.mubr.msk.f32.gmra.mxu1 %vm171_vm2, %v159_v43  ;;  %2266 = vmatprep.subr.mxu1 %v379_v47  ;;  %v376_v1 = vsel %vm140_vm8, %v371_v51, 0.0 }
  0xd5   :  { %2267 = vmatpush3.msra.mxu1 %v379_v47  ;;  %2270 = vmatprep.mubr.msk.f32.mxu1 %vm171_vm2, %v374_v52  ;;  %v490_v58 = vsel %vm158_vm3, %v486_v55, %v483_v53  ;;  %v488_v62 = vsel %vm158_vm3, %v484_v56, %v485_v57  ;;  %v489_v63 = vsel %vm158_vm3, %v483_v53, %v484_v56  ;;  %v2045_v53 = vld [vmem:[%s2948_s1 + $0x5] ss:$0 sm:$0xff] }
  0xd6   :  { %2268 = vmatprep.subr.mxu1 %v378_v54  ;;  %v491_v59 = vsel %vm142_vm7, %v490_v58, 0.0  ;;  %v600_v60 = vrot.slane %v490_v58, 7  ;;  %v487_v0 = vsel %vm158_vm3, %v485_v57, %v486_v55  ;;  %v493_v4 = vsel %vm144_vm9, %v488_v62, 0.0 }
  0xd7   :  { %2269 = vmatpush3.msra.mxu1 %v378_v54  ;;  %2284 = vmatprep.mubr.msk.f32.mxu0 %vm171_vm2, %v491_v59  ;;  %v603_v3 = vrot.slane %v487_v0, 7  ;;  %v601_v5 = vrot.slane %v489_v63, 7  ;;  %v602_v6 = vrot.slane %v488_v62, 7 }
  0xd8   :  { %2271 = vmatmul.mubr.msk.f32.vlgmr.msra.gmra.mxu1 %vm171_vm2, %v372_v48  ;;  %2285 = vmatmul.mubr.msk.f32.vlgmr.msra.gmra.mxu0 %vm171_vm2, %v489_v63 }
  0xd9   :  { %2290 = vmatprep.subr.mxu1 %v615_v61  ;;  %2273 = vmatprep.mubr.msk.f32.mxu1 %vm171_vm2, %v376_v1  ;;  %v607_v8 = vsel %vm158_vm3, %v603_v3, %v600_v60  ;;  %v605_v11 = vsel %vm158_vm3, %v601_v5, %v602_v6  ;;  %v606_v12 = vsel %vm158_vm3, %v600_v60, %v601_v5 }
  0xda   :  { %2287 = vmatprep.mubr.msk.f32.mxu0 %vm171_vm2, %v493_v4  ;;  %2291 = vmatpush3.msra.mxu1 %v615_v61  ;;  %v608_v10 = vsel %vm146_vm10, %v607_v8, 0.0  ;;  %v610_v13 = vsel %vm148_vm11, %v605_v11, 0.0  ;;  %v604_v14 = vsel %vm158_vm3, %v602_v6, %v603_v3 }
  0xdb   :  { %2292 = vmatprep.subr.mxu1 %v614_v2  ;;  %2305 = vmatpush3.msra.mxu0 %v749_v20  ;;  %v1073_v20 = vld [vmem:[%s2948_s1 + $0x110] sm:$0xff] }
  0xdc   :  { %2293 = vmatpush3.msra.mxu1 %v614_v2  ;;  %2288 = vmatmul.mubr.msk.f32.gmra.mxu0 %vm171_vm2, %v487_v0 }
  0xdd   :  { %2274 = vmatmul.mubr.msk.f32.gmra.mxu1 %vm171_vm2, %v370_v49  ;;  %2294 = vmatprep.subr.mxu1 %v613_v7 }
  0xde   :  { %2295 = vmatpush3.msra.mxu1 %v613_v7  ;;  %2298 = vmatprep.mubr.msk.f32.mxu1 %vm171_vm2, %v608_v10  ;;  %v1075_v10 = vld [vmem:[%s2948_s1 + $0x120] sm:$0xff] }
  0xdf   :  { %2296 = vmatprep.subr.mxu1 %v612_v9  ;;  %2306 = vmatprep.subr.mxu0 %v748_v22 }
  0xe0   :  { %2297 = vmatpush3.msra.mxu1 %v612_v9  ;;  %2307 = vmatpush3.msra.mxu0 %v748_v22 }
  0xe1   :  { %2299 = vmatmul.mubr.msk.f32.vlgmr.msra.gmra.mxu1 %vm171_vm2, %v606_v12  ;;  %2318 = vmatprep.subr.mxu1 %v733_v17 }
  0xe2   :  { %2301 = vmatprep.mubr.msk.f32.mxu1 %vm171_vm2, %v610_v13  ;;  %2319 = vmatpush3.msra.mxu1 %v733_v17 }
  0xe3   :  { %2320 = vmatprep.subr.mxu1 %v732_v18  ;;  %2308 = vmatprep.subr.mxu0 %v747_v24 }
  0xe4   :  { %2321 = vmatpush3.msra.mxu1 %v732_v18  ;;  %2309 = vmatpush3.msra.mxu0 %v747_v24 }
  0xe5   :  { %2302 = vmatmul.mubr.msk.f32.gmra.mxu1 %vm171_vm2, %v604_v14  ;;  %2322 = vmatprep.subr.mxu1 %v731_v19  ;;  %v1074_v14 = vld [vmem:[%s2948_s1 + $0x118] sm:$0xff] }
  0xe6   :  { %2323 = vmatpush3.msra.mxu1 %v731_v19  ;;  %2310 = vmatprep.subr.mxu0 %v746_v25 }
  0xe7   :  { %2324 = vmatprep.subr.mxu1 %v730_v21  ;;  %2311 = vmatpush3.msra.mxu0 %v746_v25 }
  0xe8   :  { %2325 = vmatpush3.msra.mxu1 %v730_v21  ;;  %2332 = vmatprep.subr.mxu0 %v2665_v26 }
  0xe9   :  { %2346 = vmatprep.subr.mxu1 %v1076_v28 }
 0x18a   :  { %v2258_v29 = vpop.f32.mrf.mxu0 }
 0x18c   :  { %v347_v30 = vpop.f32.mrf.mxu0 }
 0x18e   :  { %v2261_v33 = vpop.f32.mrf.mxu0 }
 0x190   :  { %v2244_v31 = vpop.f32.mrf.mxu1  ;;  %v357_v36 = vpop.f32.mrf.mxu0 }
 0x191   :  { %v353_v39 = vadd.f32 %v2258_v29, %v2244_v31 }
 0x192   :  { %v250_v32 = vpop.f32.mrf.mxu1 }
 0x193   :  { %v348_v41 = vadd.f32 %v347_v30, %v250_v32 }
 0x194   :  { %v2247_v34 = vpop.f32.mrf.mxu1 }
 0x195   :  { %v363_v45 = vadd.f32 %v2261_v33, %v2247_v34  ;;  %v957_v33 = vld [vmem:[%s2948_s1 + $0xf8] sm:$0xff] }
 0x196   :  { %v260_v35 = vpop.f32.mrf.mxu1 }
 0x197   :  { %v358_v48 = vadd.f32 %v357_v36, %v260_v35 }
 0x198   :  { %v2272_v37 = vpop.f32.mrf.mxu1  ;;  %v2286_v38 = vpop.f32.mrf.mxu0 }
 0x199   :  { %v480_v42 = vadd.f32 %v2272_v37, %v353_v39  ;;  %v956_v39 = vld [vmem:[%s2948_s1 + $0xf0] sm:$0xff] }
 0x19a   :  { %v460_v40 = vpop.f32.mrf.mxu1  ;;  %v577_v43 = vpop.f32.mrf.mxu0 }
 0x19b   :  { %v479_v46 = vadd.f32 %v460_v40, %v348_v41  ;;  %v597_v49 = vadd.f32 %v2286_v38, %v480_v42 }
 0x19c   :  { %v2289_v51 = vpop.f32.mrf.mxu0 }
 0x19d   :  { %v2275_v44 = vpop.f32.mrf.mxu1  ;;  %v596_v54 = vadd.f32 %v577_v43, %v479_v46  ;;  %v1193_v46 = vld [vmem:[%s2948_s1 + $0x148] sm:$0xff] }
 0x19e   :  { %v482_v50 = vadd.f32 %v2275_v44, %v363_v45  ;;  %v587_v61 = vpop.f32.mrf.mxu0 }
 0x19f   :  { %v470_v47 = vpop.f32.mrf.mxu1 }
 0x1a0   :  { %v481_v55 = vadd.f32 %v470_v47, %v358_v48  ;;  %v599_v58 = vadd.f32 %v2289_v51, %v482_v50  ;;  %v1192_v51 = vld [vmem:[%s2948_s1 + $0x140] sm:$0xff] }
 0x1a1   :  { %v2300_v52 = vpop.f32.mrf.mxu1 }
 0x1a2   :  { %v714_v56 = vadd.f32 %v2300_v52, %v597_v49  ;;  %v598_v63 = vadd.f32 %v587_v61, %v481_v55 }
 0x1a3   :  { %v694_v57 = vpop.f32.mrf.mxu1 }
 0x1a4   :  { %v723_v59 = vadd.f32 %v2045_v53, %v714_v56  ;;  %v713_v60 = vadd.f32 %v694_v57, %v596_v54  ;;  %v1191_v56 = vld [vmem:[%s2948_s1 + $0x138] sm:$0xff] }
 0x1a5   :  { %v2303_v62 = vpop.f32.mrf.mxu1 }
 0x1a6   :  { %v722_v0 = vadd.f32 %v2045_v53, %v713_v60  ;;  %v716_v1 = vadd.f32 %v2303_v62, %v599_v58  ;;  %v727_v2 = vmax.f32 %v723_v59, 0.0  ;;  %v1190_v58 = vld [vmem:[%s2948_s1 + $0x130] sm:$0xff] }
 0x1a7   :  { %v704_v3 = vpop.f32.mrf.mxu1 }
 0x1a8   :  { %v726_v4 = vmax.f32 %v722_v0, 0.0  ;;  %v725_v5 = vadd.f32 %v2045_v53, %v716_v1  ;;  %v715_v6 = vadd.f32 %v704_v3, %v598_v63  ;;  %v735_v11 = vrot.slane %v727_v2, 7  ;;  %v1311_v0 = vld [vmem:[%s2948_s1 + $0x168] sm:$0xff]  ;;  %v1310_v1 = vld [vmem:[%s2948_s1 + $0x160] sm:$0xff] }
 0x1a9   :  { %v1327_v3 = vld [vmem:[%s2948_s1 + $0x188] sm:$0xff] }
 0x1aa   :  { %v734_v7 = vrot.slane %v726_v4, 7  ;;  %v729_v8 = vmax.f32 %v725_v5, 0.0  ;;  %v724_v9 = vadd.f32 %v2045_v53, %v715_v6  ;;  %2326 = vmatprep.mubr.msk.f32.mxu1 %vm171_vm2, %v726_v4  ;;  %v1308_v4 = vld [vmem:[%s2948_s1 + $0x150] sm:$0xff]  ;;  %v1326_v5 = vld [vmem:[%s2948_s1 + $0x180] sm:$0xff]  ;;  %v1325_v6 = vld [vmem:[%s2948_s1 + $0x178] sm:$0xff] }
 0x1ab   :  { %2327 = vmatmul.mubr.msk.f32.vlgmr.msra.gmra.mxu1 %vm171_vm2, %v727_v2  ;;  %v1309_v2 = vld [vmem:[%s2948_s1 + $0x158] sm:$0xff] }
 0x1ac   :  { %v737_v12 = vrot.slane %v729_v8, 7  ;;  %v728_v13 = vmax.f32 %v724_v9, 0.0  ;;  %2347 = vmatpush3.msra.mxu1 %v1076_v28  ;;  %v740_v17 = vsel %vm158_vm3, %v734_v7, %v735_v11  ;;  %v958_v28 = vld [vmem:[%s2948_s1 + $0x100] sm:$0xff]  ;;  %v1654_v9 = vld [vmem:[%s2948_s1 + $0x1c8] sm:$0xff] }
 0x1ad   :  { %2348 = vmatprep.subr.mxu1 %v1075_v10  ;;  %v945_v24 = vrot.slane %v740_v17, 7 }
 0x1ae   :  { %v736_v18 = vrot.slane %v728_v13, 7  ;;  %2329 = vmatprep.mubr.msk.f32.mxu1 %vm171_vm2, %v728_v13  ;;  %v741_v19 = vsel %vm158_vm3, %v737_v12, %v734_v7  ;;  %2349 = vmatpush3.msra.mxu1 %v1075_v10  ;;  %v1324_v7 = vld [vmem:[%s2948_s1 + $0x170] sm:$0xff] }
 0x1af   :  { %2330 = vmatmul.mubr.msk.f32.gmra.mxu1 %vm171_vm2, %v729_v8  ;;  %v742_v21 = vsel %vm134_vm4, %v741_v19, 0.0  ;;  %v944_v22 = vrot.slane %v741_v19, 7  ;;  %2350 = vmatprep.subr.mxu1 %v1074_v14  ;;  %v2800_v8 = vld [vmem:[%s2948_s1 + $0x1a8] sm:$0xff] }
 0x1b0   :  { %2312 = vmatprep.mubr.msk.f32.mxu0 %vm171_vm2, %v742_v21  ;;  %v739_v25 = vsel %vm158_vm3, %v735_v11, %v736_v18  ;;  %v738_v29 = vsel %vm158_vm3, %v736_v18, %v737_v12  ;;  %2351 = vmatpush3.msra.mxu1 %v1074_v14 }
 0x1b1   :  { %2313 = vmatmul.mubr.msk.f32.vlgmr.msra.gmra.mxu0 %vm171_vm2, %v740_v17  ;;  %v744_v30 = vsel %vm136_vm5, %v739_v25, 0.0  ;;  %v946_v31 = vrot.slane %v739_v25, 7  ;;  %v947_v32 = vrot.slane %v738_v29, 7  ;;  %2352 = vmatprep.subr.mxu1 %v1073_v20  ;;  %v950_v34 = vsel %vm158_vm3, %v944_v22, %v945_v24 }
 0x1b2   :  { %2315 = vmatprep.mubr.msk.f32.mxu0 %vm171_vm2, %v744_v30  ;;  %2333 = vmatpush3.msra.mxu0 %v2665_v26  ;;  %v1062_v41 = vrot.slane %v950_v34, 7 }
 0x1b3   :  { %2334 = vmatprep.subr.mxu0 %v958_v28  ;;  %v948_v35 = vsel %vm158_vm3, %v946_v31, %v947_v32  ;;  %v951_v36 = vsel %vm158_vm3, %v947_v32, %v944_v22  ;;  %2353 = vmatpush3.msra.mxu1 %v1073_v20  ;;  %v949_v37 = vsel %vm158_vm3, %v945_v24, %v946_v31 }
 0x1b4   :  { %2335 = vmatpush3.msra.mxu0 %v958_v28  ;;  %v952_v26 = vsel %vm138_vm6, %v951_v36, 0.0  ;;  %v1061_v38 = vrot.slane %v951_v36, 7  ;;  %v1064_v40 = vrot.slane %v948_v35, 7  ;;  %v1063_v42 = vrot.slane %v949_v37, 7  ;;  %2374 = vmatprep.subr.mxu1 %v1327_v3 }
 0x1b5   :  { %2316 = vmatmul.mubr.msk.f32.gmra.mxu0 %vm171_vm2, %v738_v29  ;;  %2336 = vmatprep.subr.mxu0 %v957_v33  ;;  %v954_v50 = vsel %vm140_vm8, %v949_v37, 0.0 }
 0x1b6   :  { %2337 = vmatpush3.msra.mxu0 %v957_v33  ;;  %2340 = vmatprep.mubr.msk.f32.mxu0 %vm171_vm2, %v952_v26  ;;  %v1068_v43 = vsel %vm158_vm3, %v1064_v40, %v1061_v38  ;;  %v1066_v47 = vsel %vm158_vm3, %v1062_v41, %v1063_v42  ;;  %v1067_v48 = vsel %vm158_vm3, %v1061_v38, %v1062_v41  ;;  %v2066_v38 = vld [vmem:[%s2948_s1 + $0x6] ss:$0 sm:$0xff] }
 0x1b7   :  { %2338 = vmatprep.subr.mxu0 %v956_v39  ;;  %v1069_v44 = vsel %vm142_vm7, %v1068_v43, 0.0  ;;  %v1178_v45 = vrot.slane %v1068_v43, 7  ;;  %v1065_v49 = vsel %vm158_vm3, %v1063_v42, %v1064_v40  ;;  %v1071_v53 = vsel %vm144_vm9, %v1066_v47, 0.0 }
 0x1b8   :  { %2339 = vmatpush3.msra.mxu0 %v956_v39  ;;  %2354 = vmatprep.mubr.msk.f32.mxu1 %vm171_vm2, %v1069_v44  ;;  %v1181_v52 = vrot.slane %v1065_v49, 7  ;;  %v1179_v54 = vrot.slane %v1067_v48, 7  ;;  %v1180_v55 = vrot.slane %v1066_v47, 7 }
 0x1b9   :  { %2341 = vmatmul.mubr.msk.f32.vlgmr.msra.gmra.mxu0 %vm171_vm2, %v950_v34  ;;  %2355 = vmatmul.mubr.msk.f32.vlgmr.msra.gmra.mxu1 %vm171_vm2, %v1067_v48 }
 0x1ba   :  { %2360 = vmatprep.subr.mxu0 %v1193_v46  ;;  %2343 = vmatprep.mubr.msk.f32.mxu0 %vm171_vm2, %v954_v50  ;;  %v1185_v57 = vsel %vm158_vm3, %v1181_v52, %v1178_v45  ;;  %v1183_v60 = vsel %vm158_vm3, %v1179_v54, %v1180_v55  ;;  %v1184_v61 = vsel %vm158_vm3, %v1178_v45, %v1179_v54 }
 0x1bb   :  { %2357 = vmatprep.mubr.msk.f32.mxu1 %vm171_vm2, %v1071_v53  ;;  %2361 = vmatpush3.msra.mxu0 %v1193_v46  ;;  %v1186_v59 = vsel %vm146_vm10, %v1185_v57, 0.0  ;;  %v1188_v62 = vsel %vm148_vm11, %v1183_v60, 0.0  ;;  %v1182_v63 = vsel %vm158_vm3, %v1180_v55, %v1181_v52 }
 0x1bc   :  { %2362 = vmatprep.subr.mxu0 %v1192_v51  ;;  %2375 = vmatpush3.msra.mxu1 %v1327_v3  ;;  %v1651_v3 = vld [vmem:[%s2948_s1 + $0x1b0] sm:$0xff] }
 0x1bd   :  { %2363 = vmatpush3.msra.mxu0 %v1192_v51  ;;  %2358 = vmatmul.mubr.msk.f32.gmra.mxu1 %vm171_vm2, %v1065_v49 }
 0x1be   :  { %2344 = vmatmul.mubr.msk.f32.gmra.mxu0 %vm171_vm2, %v948_v35  ;;  %2364 = vmatprep.subr.mxu0 %v1191_v56 }
 0x1bf   :  { %2365 = vmatpush3.msra.mxu0 %v1191_v56  ;;  %2368 = vmatprep.mubr.msk.f32.mxu0 %vm171_vm2, %v1186_v59  ;;  %v1653_v59 = vld [vmem:[%s2948_s1 + $0x1c0] sm:$0xff] }
 0x1c0   :  { %2366 = vmatprep.subr.mxu0 %v1190_v58  ;;  %2376 = vmatprep.subr.mxu1 %v1326_v5 }
 0x1c1   :  { %2367 = vmatpush3.msra.mxu0 %v1190_v58  ;;  %2377 = vmatpush3.msra.mxu1 %v1326_v5 }
 0x1c2   :  { %2369 = vmatmul.mubr.msk.f32.vlgmr.msra.gmra.mxu0 %vm171_vm2, %v1184_v61  ;;  %2388 = vmatprep.subr.mxu0 %v1311_v0 }
 0x1c3   :  { %2371 = vmatprep.mubr.msk.f32.mxu0 %vm171_vm2, %v1188_v62  ;;  %2389 = vmatpush3.msra.mxu0 %v1311_v0 }
 0x1c4   :  { %2390 = vmatprep.subr.mxu0 %v1310_v1  ;;  %2378 = vmatprep.subr.mxu1 %v1325_v6 }
 0x1c5   :  { %2391 = vmatpush3.msra.mxu0 %v1310_v1  ;;  %2379 = vmatpush3.msra.mxu1 %v1325_v6 }
 0x1c6   :  { %2372 = vmatmul.mubr.msk.f32.gmra.mxu0 %vm171_vm2, %v1182_v63  ;;  %2392 = vmatprep.subr.mxu0 %v1309_v2  ;;  %v1652_v63 = vld [vmem:[%s2948_s1 + $0x1b8] sm:$0xff] }
 0x1c7   :  { %2393 = vmatpush3.msra.mxu0 %v1309_v2  ;;  %2380 = vmatprep.subr.mxu1 %v1324_v7 }
 0x1c8   :  { %2394 = vmatprep.subr.mxu0 %v1308_v4  ;;  %2381 = vmatpush3.msra.mxu1 %v1324_v7 }
 0x1c9   :  { %2395 = vmatpush3.msra.mxu0 %v1308_v4  ;;  %2402 = vmatprep.subr.mxu1 %v2800_v8 }
 0x1ca   :  { %2416 = vmatprep.subr.mxu0 %v1654_v9 }
 0x26b   :  { %v2328_v10 = vpop.f32.mrf.mxu1 }
 0x26d   :  { %v925_v11 = vpop.f32.mrf.mxu1 }
 0x26f   :  { %v2331_v14 = vpop.f32.mrf.mxu1 }
 0x271   :  { %v2314_v12 = vpop.f32.mrf.mxu0  ;;  %v935_v19 = vpop.f32.mrf.mxu1 }
 0x272   :  { %v931_v22 = vadd.f32 %v2328_v10, %v2314_v12 }
 0x273   :  { %v828_v13 = vpop.f32.mrf.mxu0 }
 0x274   :  { %v926_v25 = vadd.f32 %v925_v11, %v828_v13 }
 0x275   :  { %v2317_v17 = vpop.f32.mrf.mxu0 }
 0x276   :  { %v941_v31 = vadd.f32 %v2331_v14, %v2317_v17  ;;  %v1535_v14 = vld [vmem:[%s2948_s1 + $0x198] sm:$0xff] }
 0x277   :  { %v838_v18 = vpop.f32.mrf.mxu0 }
 0x278   :  { %v936_v34 = vadd.f32 %v935_v19, %v838_v18 }
 0x279   :  { %v2342_v20 = vpop.f32.mrf.mxu0  ;;  %v2356_v21 = vpop.f32.mrf.mxu1 }
 0x27a   :  { %v1058_v28 = vadd.f32 %v2342_v20, %v931_v22  ;;  %v1534_v22 = vld [vmem:[%s2948_s1 + $0x190] sm:$0xff] }
 0x27b   :  { %v1038_v24 = vpop.f32.mrf.mxu0  ;;  %v1155_v29 = vpop.f32.mrf.mxu1 }
 0x27c   :  { %v1057_v32 = vadd.f32 %v1038_v24, %v926_v25  ;;  %v1175_v35 = vadd.f32 %v2356_v21, %v1058_v28 }
 0x27d   :  { %v2359_v37 = vpop.f32.mrf.mxu1 }
 0x27e   :  { %v2345_v30 = vpop.f32.mrf.mxu0  ;;  %v1174_v39 = vadd.f32 %v1155_v29, %v1057_v32  ;;  %v1771_v32 = vld [vmem:[%s2948_s1 + $0x1e8] sm:$0xff] }
 0x27f   :  { %v1060_v36 = vadd.f32 %v2345_v30, %v941_v31  ;;  %v1165_v46 = vpop.f32.mrf.mxu1 }
 0x280   :  { %v1048_v33 = vpop.f32.mrf.mxu0 }
 0x281   :  { %v1059_v40 = vadd.f32 %v1048_v33, %v936_v34  ;;  %v1177_v43 = vadd.f32 %v2359_v37, %v1060_v36  ;;  %v1770_v37 = vld [vmem:[%s2948_s1 + $0x1e0] sm:$0xff] }
 0x282   :  { %v2370_v26 = vpop.f32.mrf.mxu0 }
 0x283   :  { %v1292_v41 = vadd.f32 %v2370_v26, %v1175_v35  ;;  %v1176_v48 = vadd.f32 %v1165_v46, %v1059_v40 }
 0x284   :  { %v1272_v42 = vpop.f32.mrf.mxu0 }
 0x285   :  { %v1301_v44 = vadd.f32 %v2066_v38, %v1292_v41  ;;  %v1291_v45 = vadd.f32 %v1272_v42, %v1174_v39  ;;  %v1769_v41 = vld [vmem:[%s2948_s1 + $0x1d8] sm:$0xff] }
 0x286   :  { %v2373_v47 = vpop.f32.mrf.mxu0 }
 0x287   :  { %v1300_v49 = vadd.f32 %v2066_v38, %v1291_v45  ;;  %v1294_v50 = vadd.f32 %v2373_v47, %v1177_v43  ;;  %v1305_v51 = vmax.f32 %v1301_v44, 0.0  ;;  %v1768_v43 = vld [vmem:[%s2948_s1 + $0x1d0] sm:$0xff] }
 0x288   :  { %v1282_v52 = vpop.f32.mrf.mxu0 }
 0x289   :  { %v1304_v53 = vmax.f32 %v1300_v49, 0.0  ;;  %v1303_v54 = vadd.f32 %v2066_v38, %v1294_v50  ;;  %v1293_v55 = vadd.f32 %v1282_v52, %v1176_v48  ;;  %v1313_v60 = vrot.slane %v1305_v51, 7 }
 0x28a   :  { %v2457_v49 = vmov 0.0  }
 0x28b   :  { %v1312_v56 = vrot.slane %v1304_v53, 7  ;;  %v1307_v57 = vmax.f32 %v1303_v54, 0.0  ;;  %v1302_v58 = vadd.f32 %v2066_v38, %v1293_v55  ;;  %2396 = vmatprep.mubr.msk.f32.mxu0 %vm171_vm2, %v1304_v53 }
 0x28c   :  { %2397 = vmatmul.mubr.msk.f32.vlgmr.msra.gmra.mxu0 %vm171_vm2, %v1305_v51 }
 0x28d   :  { %v1315_v61 = vrot.slane %v1307_v57, 7  ;;  %v1306_v62 = vmax.f32 %v1302_v58, 0.0  ;;  %2417 = vmatpush3.msra.mxu0 %v1654_v9  ;;  %v1318_v0 = vsel %vm158_vm3, %v1312_v56, %v1313_v60  ;;  %v1536_v9 = vld [vmem:[%s2948_s1 + $0x1a0] sm:$0xff]  ;;  %v2910_v58 = vand.u32 127, %v125_v15 }
 0x28e   :  { %2418 = vmatprep.subr.mxu0 %v1653_v59  ;;  %v1523_v6 = vrot.slane %v1318_v0, 7 }
 0x28f   :  { %v1314_v1 = vrot.slane %v1306_v62, 7  ;;  %2399 = vmatprep.mubr.msk.f32.mxu0 %vm171_vm2, %v1306_v62  ;;  %v1319_v2 = vsel %vm158_vm3, %v1315_v61, %v1312_v56  ;;  %2419 = vmatpush3.msra.mxu0 %v1653_v59  ;;  %vm1888_vm12 = vcmp.eq.s32.totalorder %v2910_v58, 0 }
 0x290   :  { %2400 = vmatmul.mubr.msk.f32.gmra.mxu0 %vm171_vm2, %v1307_v57  ;;  %v1320_v4 = vsel %vm134_vm4, %v1319_v2, 0.0  ;;  %v1522_v5 = vrot.slane %v1319_v2, 7  ;;  %2420 = vmatprep.subr.mxu0 %v1652_v63 }
 0x291   :  { %2382 = vmatprep.mubr.msk.f32.mxu1 %vm171_vm2, %v1320_v4  ;;  %v1317_v7 = vsel %vm158_vm3, %v1313_v60, %v1314_v1  ;;  %v1316_v10 = vsel %vm158_vm3, %v1314_v1, %v1315_v61  ;;  %2421 = vmatpush3.msra.mxu0 %v1652_v63 }
 0x292   :  { %2383 = vmatmul.mubr.msk.f32.vlgmr.msra.gmra.mxu1 %vm171_vm2, %v1318_v0  ;;  %v1322_v11 = vsel %vm136_vm5, %v1317_v7, 0.0  ;;  %v1524_v12 = vrot.slane %v1317_v7, 7  ;;  %v1525_v13 = vrot.slane %v1316_v10, 7  ;;  %2422 = vmatprep.subr.mxu0 %v1651_v3  ;;  %v1528_v17 = vsel %vm158_vm3, %v1522_v5, %v1523_v6 }
 0x293   :  { %2385 = vmatprep.mubr.msk.f32.mxu1 %vm171_vm2, %v1322_v11  ;;  %2403 = vmatpush3.msra.mxu1 %v2800_v8  ;;  %v1640_v25 = vrot.slane %v1528_v17, 7 }
 0x294   :  { %2404 = vmatprep.subr.mxu1 %v1536_v9  ;;  %v1526_v18 = vsel %vm158_vm3, %v1524_v12, %v1525_v13  ;;  %v1529_v19 = vsel %vm158_vm3, %v1525_v13, %v1522_v5  ;;  %2423 = vmatpush3.msra.mxu0 %v1651_v3  ;;  %v1527_v20 = vsel %vm158_vm3, %v1523_v6, %v1524_v12  ;;  %v14_v5 = vld [vmem:[%s2948_s1 + $0x9] sm:$0x1]  ;;  %v2088_v6 = vsel %vm1888_vm12, 1.0, %v2457_v49  ;;  %v2087_v13 = vld [vmem:[%s2948_s1 + $0x7] ss:$0 sm:$0xff] }
 0x295   :  { %2405 = vmatpush3.msra.mxu1 %v1536_v9  ;;  %v1530_v8 = vsel %vm138_vm6, %v1529_v19, 0.0  ;;  %v1639_v21 = vrot.slane %v1529_v19, 7  ;;  %v1642_v24 = vrot.slane %v1526_v18, 7  ;;  %v1641_v28 = vrot.slane %v1527_v20, 7  ;;  %2444 = vmatprep.subr.mxu0 %v2457_v49 }
 0x296   :  { %2386 = vmatmul.mubr.msk.f32.gmra.mxu1 %vm171_vm2, %v1316_v10  ;;  %2406 = vmatprep.subr.mxu1 %v1535_v14  ;;  %v1532_v36 = vsel %vm140_vm8, %v1527_v20, 0.0 }
 0x297   :  { %2407 = vmatpush3.msra.mxu1 %v1535_v14  ;;  %2410 = vmatprep.mubr.msk.f32.mxu1 %vm171_vm2, %v1530_v8  ;;  %v1646_v29 = vsel %vm158_vm3, %v1642_v24, %v1639_v21  ;;  %v1644_v33 = vsel %vm158_vm3, %v1640_v25, %v1641_v28  ;;  %v1645_v34 = vsel %vm158_vm3, %v1639_v21, %v1640_v25 }
 0x298   :  { %2408 = vmatprep.subr.mxu1 %v1534_v22  ;;  %v1647_v30 = vsel %vm142_vm7, %v1646_v29, 0.0  ;;  %v1756_v31 = vrot.slane %v1646_v29, 7  ;;  %v1643_v35 = vsel %vm158_vm3, %v1641_v28, %v1642_v24  ;;  %v1649_v38 = vsel %vm144_vm9, %v1644_v33, 0.0  ;;  %v2089_v29 = vld [vmem:[%s2948_s1 + $0x8] ss:$0 sm:$0xff] }
 0x299   :  { %2409 = vmatpush3.msra.mxu1 %v1534_v22  ;;  %2424 = vmatprep.mubr.msk.f32.mxu0 %vm171_vm2, %v1647_v30  ;;  %v1759_v26 = vrot.slane %v1643_v35, 7  ;;  %v1757_v39 = vrot.slane %v1645_v34, 7  ;;  %v1758_v40 = vrot.slane %v1644_v33, 7  ;;  %v1899_v14 = vmul.f32 %v2088_v6, %v14_v5 }
 0x29a   :  { %2411 = vmatmul.mubr.msk.f32.vlgmr.msra.gmra.mxu1 %vm171_vm2, %v1528_v17  ;;  %2425 = vmatmul.mubr.msk.f32.vlgmr.msra.gmra.mxu0 %vm171_vm2, %v1645_v34  ;;  %v1902_v17 = vsub.s32 0, %v2520_v16 }
 0x29b   :  { %2430 = vmatprep.subr.mxu1 %v1771_v32  ;;  %2413 = vmatprep.mubr.msk.f32.mxu1 %vm171_vm2, %v1532_v36  ;;  %v1763_v42 = vsel %vm158_vm3, %v1759_v26, %v1756_v31  ;;  %v1761_v45 = vsel %vm158_vm3, %v1757_v39, %v1758_v40  ;;  %v1762_v46 = vsel %vm158_vm3, %v1756_v31, %v1757_v39 }
 0x29c   :  { %2427 = vmatprep.mubr.msk.f32.mxu0 %vm171_vm2, %v1649_v38  ;;  %2431 = vmatpush3.msra.mxu1 %v1771_v32  ;;  %v1764_v44 = vsel %vm146_vm10, %v1763_v42, 0.0  ;;  %v1766_v47 = vsel %vm148_vm11, %v1761_v45, 0.0  ;;  %v1760_v48 = vsel %vm158_vm3, %v1758_v40, %v1759_v26  ;;  %v1903_v30 = vrot.slane %v1899_v14, %v1902_v17 }
 0x29d   :  { %2432 = vmatprep.subr.mxu1 %v1770_v37 }
 0x29e   :  { %2433 = vmatpush3.msra.mxu1 %v1770_v37  ;;  %2428 = vmatmul.mubr.msk.f32.gmra.mxu0 %vm171_vm2, %v1643_v35 }
 0x29f   :  { %2414 = vmatmul.mubr.msk.f32.gmra.mxu1 %vm171_vm2, %v1526_v18  ;;  %2434 = vmatprep.subr.mxu1 %v1769_v41 }
 0x2a0   :  { %2435 = vmatpush3.msra.mxu1 %v1769_v41  ;;  %2438 = vmatprep.mubr.msk.f32.mxu1 %vm171_vm2, %v1764_v44 }
 0x2a1   :  { %2436 = vmatprep.subr.mxu1 %v1768_v43  ;;  %2452 = vmatprep.mubr.msk.f32.mxu0 %vm2458_vm13, %v2457_v49 }
 0x2a2   :  { %2437 = vmatpush3.msra.mxu1 %v1768_v43 }
 0x2a3   :  { %2439 = vmatmul.mubr.msk.f32.vlgmr.msra.gmra.mxu1 %vm171_vm2, %v1762_v46 }
 0x2a4   :  { %2441 = vmatprep.mubr.msk.f32.mxu1 %vm171_vm2, %v1766_v47 }
 0x2a7   :  { %2442 = vmatmul.mubr.msk.f32.gmra.mxu1 %vm171_vm2, %v1760_v48 }
 0x34c   :  { %v2398_v50 = vpop.f32.mrf.mxu0 }
 0x34e   :  { %v1503_v51 = vpop.f32.mrf.mxu0 }
 0x350   :  { %v2401_v54 = vpop.f32.mrf.mxu0 }
 0x352   :  { %v2384_v52 = vpop.f32.mrf.mxu1  ;;  %v1513_v57 = vpop.f32.mrf.mxu0 }
 0x353   :  { %v1509_v61 = vadd.f32 %v2398_v50, %v2384_v52 }
 0x354   :  { %v1406_v53 = vpop.f32.mrf.mxu1 }
 0x355   :  { %v1504_v63 = vadd.f32 %v1503_v51, %v1406_v53 }
 0x356   :  { %v2387_v55 = vpop.f32.mrf.mxu1 }
 0x357   :  { %v1519_v3 = vadd.f32 %v2401_v54, %v2387_v55  ;;  %v129_v54 = vadd.s32 24, %v2520_v16 }
 0x358   :  { %v1416_v56 = vpop.f32.mrf.mxu1 }
 0x359   :  { %v1514_v7 = vadd.f32 %v1513_v57, %v1416_v56  ;;  %v133_v55 = vand.u32 15, %v129_v54  ;;  %v127_v56 = vadd.s32 8, %v2520_v16  ;;  %v1920_v57 = vmul.u32 2, %v2910_v58 }
 0x35a   :  { %v2412_v59 = vpop.f32.mrf.mxu1  ;;  %v2426_v60 = vpop.f32.mrf.mxu0 }
 0x35b   :  { %v1636_v0 = vadd.f32 %v2412_v59, %v1509_v61  ;;  %vm1924_vm14 = vcmp.eq.s32.totalorder %v133_v55, %v1920_v57  ;;  %v131_v59 = vand.u32 15, %v127_v56  ;;  %vm1923_vm15 = vcmp.eq.s32.totalorder %v2531_v27, %v1920_v57 }
 0x35c   :  { %v1616_v62 = vpop.f32.mrf.mxu1  ;;  %v1733_v1 = vpop.f32.mrf.mxu0  ;;  %vm1921_vm1 = vcmp.eq.s32.totalorder %v2527_v23, %v1920_v57 }
 0x35d   :  { %v1635_v4 = vadd.f32 %v1616_v62, %v1504_v63  ;;  %v1753_v9 = vadd.f32 %v2426_v60, %v1636_v0  ;;  %v2093_v60 = vsel %vm1924_vm14, 1.0, %v2457_v49  ;;  %vm1922_vm0 = vcmp.eq.s32.totalorder %v131_v59, %v1920_v57 }
 0x35e   :  { %v2429_v11 = vpop.f32.mrf.mxu0  ;;  %v2092_v0 = vsel %vm1923_vm15, 1.0, %v2457_v49  ;;  %v2090_v5 = vsel %vm1921_vm1, 1.0, %v2457_v49 }
 0x35f   :  { %v2415_v2 = vpop.f32.mrf.mxu1  ;;  %v1752_v18 = vadd.f32 %v1733_v1, %v1635_v4  ;;  %v1933_v1 = vshra.s32 %v2910_v58, 4 }
 0x360   :  { %v1638_v10 = vadd.f32 %v2415_v2, %v1519_v3  ;;  %v1743_v25 = vpop.f32.mrf.mxu0  ;;  %v2091_v2 = vsel %vm1922_vm0, 1.0, %v2457_v49 }
 0x361   :  { %v1626_v15 = vpop.f32.mrf.mxu1  ;;  %vm1934_vm3 = vcmp.eq.s32.totalorder %v1933_v1, %v2520_v16 }
 0x362   :  { %v1637_v19 = vadd.f32 %v1626_v15, %v1514_v7  ;;  %v1755_v21 = vadd.f32 %v2429_v11, %v1638_v10  ;;  %v2094_v23 = vsel %vm1934_vm3, 1.0, %v2457_v49 }
 0x363   :  { %v2440_v12 = vpop.f32.mrf.mxu1 }
 0x364   :  { %v1870_v20 = vadd.f32 %v2440_v12, %v1753_v9  ;;  %v1754_v31 = vadd.f32 %v1743_v25, %v1637_v19 }
 0x365   :  { %v1850_v8 = vpop.f32.mrf.mxu1 }
 0x366   :  { %v1879_v22 = vadd.f32 %v2087_v13, %v1870_v20  ;;  %v1869_v24 = vadd.f32 %v1850_v8, %v1752_v18 }
 0x367   :  { %v2443_v28 = vpop.f32.mrf.mxu1 }
 0x368   :  { %v1883_v32 = vmax.f32 %v1879_v22, 0.0  ;;  %v1878_v33 = vadd.f32 %v2087_v13, %v1869_v24  ;;  %v1872_v34 = vadd.f32 %v2443_v28, %v1755_v21 }
 0x369   :  { %v1860_v35 = vpop.f32.mrf.mxu1 }
 0x36a   :  { %v1882_v36 = vmax.f32 %v1878_v33, 0.0  ;;  %v1881_v37 = vadd.f32 %v2087_v13, %v1872_v34  ;;  %v1871_v26 = vadd.f32 %v1860_v35, %v1754_v31  ;;  %v1896_v38 = vmul.f32 %v2089_v29, %v1883_v32 }
 0x36c   :  { %v1885_v39 = vmax.f32 %v1881_v37, 0.0  ;;  %v1880_v40 = vadd.f32 %v2087_v13, %v1871_v26  ;;  %v1905_v41 = vadd.f32 %v1903_v30, %v1896_v38  ;;  %v1895_v42 = vmul.f32 %v2089_v29, %v1882_v36 }
 0x36e   :  { %v1884_v43 = vmax.f32 %v1880_v40, 0.0  ;;  %v1911_v44 = vsel %vm171_vm2, %v1905_v41, 0.0  ;;  %v1904_v45 = vadd.f32 %v1903_v30, %v1895_v42  ;;  %v1898_v46 = vmul.f32 %v2089_v29, %v1885_v39 }
 0x36f   :  { %1912 = vadd.xlane.f32.xlu1 %v1911_v44 }
 0x370   :  { %v1907_v47 = vadd.f32 %v1903_v30, %v1898_v46  ;;  %v1897_v48 = vmul.f32 %v2089_v29, %v1884_v43  ;;  %v1908_v50 = vsel %vm171_vm2, %v1904_v45, 0.0 }
 0x372   :  { %v1917_v51 = vsel %vm171_vm2, %v1907_v47, 0.0  ;;  %v1906_v52 = vadd.f32 %v1903_v30, %v1897_v48 }
 0x373   :  { %1909 = vadd.xlane.f32.xlu1 %v1908_v50  ;;  %1918 = vadd.xlane.f32.xlu0 %v1917_v51 }
 0x374   :  { %v1914_v53 = vsel %vm171_vm2, %v1906_v52, 0.0 }
 0x377   :  { %1915 = vadd.xlane.f32.xlu0 %v1914_v53 }
 0x3f8   :  { %v1913_v61 = vpop.xlane.xlu1 %1912 }
 0x3f9   :  { %v1938_v6 = vmul.f32 %v2091_v2, %v1913_v61 }
 0x3fc   :  { %v1919_v62 = vpop.xlane.xlu0 %1918  ;;  %v1910_v27 = vpop.xlane.xlu1 %1909 }
 0x3fd   :  { %v1940_v63 = vmul.f32 %v2093_v60, %v1919_v62  ;;  %v1937_v15 = vmul.f32 %v2090_v5, %v1910_v27 }
 0x3ff   :  { %2445 = vmatpush3.msra.mxu0 %v1940_v63 }
 0x400   :  { %v1916_v3 = vpop.xlane.xlu0 %1915  ;;  %2446 = vmatprep.subr.mxu0 %v2457_v49 }
 0x401   :  { %v1939_v4 = vmul.f32 %v2092_v0, %v1916_v3 }
 0x403   :  { %2447 = vmatpush3.msra.mxu0 %v1939_v4 }
 0x404   :  { %2448 = vmatprep.subr.mxu0 %v2457_v49 }
 0x405   :  { %2449 = vmatpush3.msra.mxu0 %v1938_v6 }
 0x406   :  { %2450 = vmatprep.subr.mxu0 %v2457_v49 }
 0x407   :  { %2451 = vmatpush3.msra.mxu0 %v1937_v15 }
 0x408   :  { %2453 = vmatmul.mubr.msk.f32.vlgmr.msra.gmra.mxu0 %vm171_vm2, %v2094_v23 }
 0x4c8   :  { %v2010_v58 = vpop.f32.mrf.mxu0 }
 0x4c9   :  { %2014 = vst [vmem:[%s2950_s2] sm:$0xff] %v2010_v58 }
 0x4ca   :  { %v2454_v7 = vpop.f32.mrf.mxu0 }

</bundles_post_ra>
